<compile_context>
chip_gen: v6e
topology: v6e:2x2x1
jax: 0.10.0
libtpu: 0.0.40
codegen_flags: <defaults>
</compile_context>

<pallas_src>
import jax
import jax.numpy as jnp
from jax import lax
from jax.experimental import pallas as pl
from jax.experimental.pallas import tpu as pltpu

EPS = 1e-5  # nn.LayerNorm default


def _make_kernel(C, C_pad, l_chunk, n_chunks, inv_l):
    needs_mask = C != C_pad
    inv_c = 1.0 / C

    def kernel(x_ref, gamma_ref, beta_ref, o_ref, sum_ref):
        # x_ref / o_ref: (TB, L, C_pad); gamma_ref / beta_ref: (1, C_pad)
        # sum_ref: (TB, 1, C_pad) f32 scratch accumulating sum over L of x_hat.
        gamma = gamma_ref[...].astype(jnp.float32)[None, :, :]   # (1, 1, C_pad)
        beta = beta_ref[...].astype(jnp.float32)[None, :, :]     # (1, 1, C_pad)
        sum_ref[...] = jnp.zeros_like(sum_ref)

        # ---- Pass 1: LayerNorm over channels, chunked over L -----------------
        @pl.loop(0, n_chunks)
        def _(i):
            start = pl.multiple_of(i * l_chunk, l_chunk)
            x = x_ref[:, pl.ds(start, l_chunk), :].astype(jnp.float32)
            # Zero-padded lanes contribute 0 to the sum, so divide by the real C.
            mu = jnp.sum(x, axis=-1, keepdims=True) * inv_c       # (TB, lc, 1)
            xc = x - mu
            if needs_mask:
                lane = lax.broadcasted_iota(jnp.int32, xc.shape, 2)
                sq = jnp.where(lane < C, xc * xc, 0.0)
            else:
                sq = xc * xc
            var = jnp.sum(sq, axis=-1, keepdims=True) * inv_c     # (TB, lc, 1)
            scale = lax.rsqrt(var + EPS) * gamma                  # gamma folded in
            x_hat = xc * scale + beta                             # padded lanes -> 0
            o_ref[:, pl.ds(start, l_chunk), :] = x_hat.astype(o_ref.dtype)
            sum_ref[...] += jnp.sum(x_hat, axis=1, keepdims=True)

        bias = sum_ref[...] * inv_l                               # (TB, 1, C_pad)

        # ---- Pass 2: subtract the mean over the sequence axis, in place ------
        @pl.loop(0, n_chunks)
        def _(i):
            start = pl.multiple_of(i * l_chunk, l_chunk)
            y = o_ref[:, pl.ds(start, l_chunk), :].astype(jnp.float32)
            o_ref[:, pl.ds(start, l_chunk), :] = (y - bias).astype(o_ref.dtype)

    return kernel


def _pick_tb(B, per_batch_bytes, target_bytes=2 << 20):
    """Batch rows per grid step: aim for ~2 MiB tiles, TB must divide B."""
    tb = max(1, min(B, target_bytes // max(per_batch_bytes, 1)))
    while B % tb != 0:
        tb -= 1
    # Prefer an even grid length (v7x has 2 TensorCores sharing the grid);
    # only shrink TB if the tile was small anyway or stays >= ~1 MiB.
    if (B // tb) % 2 != 0 and tb > 1:
        for tb2 in range(tb - 1, 0, -1):
            if B % tb2 == 0 and (B // tb2) % 2 == 0:
                if tb2 * per_batch_bytes >= (1 << 20) or tb * per_batch_bytes < (1 << 20):
                    tb = tb2
                break
    return tb


def _pick_l_chunk(L, tb, c_pad, budget_bytes=512 * 1024):
    """Rows per in-kernel chunk; sublane-aligned divisor of L, else whole L."""
    max_rows = max(8, budget_bytes // max(1, tb * c_pad * 4))
    if max_rows >= L:
        return L
    for r in range(min(L, max_rows), 7, -1):
        if L % r == 0 and r % 8 == 0:
            return r
    return L  # no aligned divisor within budget -> process the whole block


def my_layernorm(x, gamma, beta, *, chunk_rows=None):
    """x: (B, L, C); gamma, beta: (C,). Returns (B, L, C)."""
    B, L, C = x.shape
    itemsize = jnp.dtype(x.dtype).itemsize
    C_pad = ((C + 127) // 128) * 128  # lane-dense last dim (128 lanes)

    if C_pad != C:
        x_in = jnp.pad(x, ((0, 0), (0, 0), (0, C_pad - C)))
        gamma_in = jnp.pad(gamma.reshape(1, C), ((0, 0), (0, C_pad - C)))
        beta_in = jnp.pad(beta.reshape(1, C), ((0, 0), (0, C_pad - C)))
    else:
        x_in = x
        gamma_in = gamma.reshape(1, C)
        beta_in = beta.reshape(1, C)

    per_batch_bytes = L * C_pad * itemsize
    tb = _pick_tb(B, per_batch_bytes)
    l_chunk = chunk_rows if chunk_rows is not None else _pick_l_chunk(L, tb, C_pad)
    assert L % l_chunk == 0, "chunk_rows must divide L"
    n_chunks = L // l_chunk

    kernel = _make_kernel(C, C_pad, l_chunk, n_chunks, 1.0 / L)

    cost = pl.CostEstimate(
        flops=8 * B * L * C,
        transcendentals=B * L,                         # rsqrt per row
        bytes_accessed=2 * B * L * C * itemsize + 2 * C * itemsize,
    )

    out = pl.pallas_call(
        kernel,
        out_shape=jax.ShapeDtypeStruct((B, L, C_pad), x.dtype),
        grid_spec=pltpu.PrefetchScalarGridSpec(
            num_scalar_prefetch=0,
            grid=(B // tb,),
            in_specs=[
                pl.BlockSpec((tb, L, C_pad), lambda b: (b, 0, 0)),
                pl.BlockSpec((1, C_pad), lambda b: (0, 0)),
                pl.BlockSpec((1, C_pad), lambda b: (0, 0)),
            ],
            out_specs=pl.BlockSpec((tb, L, C_pad), lambda b: (b, 0, 0)),
            scratch_shapes=[pltpu.VMEM((tb, 1, C_pad), jnp.float32)],
        ),
        compiler_params=pltpu.CompilerParams(
            dimension_semantics=("parallel",),
            vmem_limit_bytes=48 * 1024 * 1024,
        ),
        cost_estimate=cost,
    )(x_in, gamma_in, beta_in)

    if C_pad != C:
        out = out[:, :, :C]
    return out


def _reference(x, gamma, beta):
    x = x.astype(jnp.float32)
    mu = jnp.mean(x, axis=-1, keepdims=True)
    var = jnp.mean((x - mu) ** 2, axis=-1, keepdims=True)
    x_hat = (x - mu) / jnp.sqrt(var + EPS) * gamma + beta
    bias = jnp.mean(x_hat, axis=1, keepdims=True)
    return x_hat - bias


if __name__ == "__main__":
    key = jax.random.PRNGKey(0)
    k1, k2, k3, k4 = jax.random.split(key, 4)

    # Primary small case (batch=2, seq=8, channels=32) — exercises the padded
    # (C=32 -> 128) lane-dense path.
    B, L, C = 2, 8, 32
    x = jax.random.normal(k1, (B, L, C), dtype=jnp.float32)
    gamma = 1.0 + 0.1 * jax.random.normal(k2, (C,), dtype=jnp.float32)
    beta = 0.1 * jax.random.normal(k3, (C,), dtype=jnp.float32)

    out = jax.block_until_ready(my_layernorm(x, gamma, beta))
    ref = _reference(x, gamma, beta)
    assert out.shape == (B, L, C)
    assert jnp.allclose(out, ref, atol=1e-5, rtol=1e-5)

    # Second tiny case forcing the multi-chunk two-pass path (4 chunks of 8 rows).
    B2, L2, C2 = 4, 32, 32
    x2 = jax.random.normal(k4, (B2, L2, C2), dtype=jnp.float32)
    out2 = jax.block_until_ready(my_layernorm(x2, gamma, beta, chunk_rows=8))
    ref2 = _reference(x2, gamma, beta)
    assert jnp.allclose(out2, ref2, atol=1e-5, rtol=1e-5)

    print("KERNEL_OK")
</pallas_src>

<mosaic_0001>
module attributes {stable_mosaic.version = 11 : i64} {
  func.func @kernel(%arg0: i32, %arg1: memref<1x8x128xf32, #tpu.memory_space<vmem>>, %arg2: memref<1x128xf32, #tpu.memory_space<vmem>>, %arg3: memref<1x128xf32, #tpu.memory_space<vmem>>, %arg4: memref<1x8x128xf32, #tpu.memory_space<vmem>>, %arg5: memref<1x1x128xf32, #tpu.memory_space<vmem>>) attributes {dimension_semantics = [#tpu.dimension_semantics<parallel>], iteration_bounds = array<i64: 2>, scalar_prefetch = 0 : i64, scratch_operands = 1 : i64, tpu.core_type = #tpu.core_type<tc>, window_params = [{transform_indices = @transform_0, window_bounds = array<i64: 1, 8, 128>}, {pipeline_mode = #tpu.pipeline_mode<synchronous>, transform_indices = @transform_1, window_bounds = array<i64: 1, 128>}, {pipeline_mode = #tpu.pipeline_mode<synchronous>, transform_indices = @transform_2, window_bounds = array<i64: 1, 128>}, {transform_indices = @transform_3, window_bounds = array<i64: 1, 8, 128>}]} {
    %c0 = arith.constant 0 : index
    %c0_0 = arith.constant 0 : index
    %0 = vector.load %arg2[%c0, %c0_0] : memref<1x128xf32, #tpu.memory_space<vmem>>, vector<1x128xf32>
    %1 = vector.shape_cast %0 : vector<1x128xf32> to vector<1x1x128xf32>
    %c0_1 = arith.constant 0 : index
    %c0_2 = arith.constant 0 : index
    %2 = vector.load %arg3[%c0_1, %c0_2] : memref<1x128xf32, #tpu.memory_space<vmem>>, vector<1x128xf32>
    %3 = vector.shape_cast %2 : vector<1x128xf32> to vector<1x1x128xf32>
    %cst = arith.constant 0.000000e+00 : f32
    %4 = vector.broadcast %cst : f32 to vector<1x1x128xf32>
    %c0_3 = arith.constant 0 : index
    %c0_4 = arith.constant 0 : index
    %c0_5 = arith.constant 0 : index
    %5 = vector.load %arg5[%c0_3, %c0_4, %c0_5] : memref<1x1x128xf32, #tpu.memory_space<vmem>>, vector<1x1x128xf32>
    tpu.vector_store %arg5[%c0_3, %c0_4, %c0_5], %4 {strides = array<i32>} : memref<1x1x128xf32, #tpu.memory_space<vmem>>, vector<1x1x128xf32>,
    %c0_i32 = arith.constant 0 : i32
    %c1_i32 = arith.constant 1 : i32
    %6 = arith.muli %c0_i32, %c1_i32 : i32
    %c0_i32_6 = arith.constant 0 : i32
    %7 = arith.addi %c0_i32_6, %6 : i32
    %c8_i32 = arith.constant 8 : i32
    %8 = arith.muli %7, %c8_i32 : i32
    %9 = tpu.assume_multiple %8, 8 : i32
    %c0_7 = arith.constant 0 : index
    %10 = arith.index_cast %9 : i32 to index
    %c0_8 = arith.constant 0 : index
    %11 = vector.load %arg1[%c0_7, %10, %c0_8] : memref<1x8x128xf32, #tpu.memory_space<vmem>>, vector<1x8x128xf32>
    %cst_9 = arith.constant dense<0.000000e+00> : vector<1x8xf32>
    %12 = vector.multi_reduction <add>, %11, %cst_9 [2] : vector<1x8x128xf32> to vector<1x8xf32>
    %13 = vector.shape_cast %12 : vector<1x8xf32> to vector<1x8x1xf32>
    %cst_10 = arith.constant 3.125000e-02 : f32
    %14 = vector.broadcast %cst_10 : f32 to vector<1x8x1xf32>
    %15 = arith.mulf %13, %14 : vector<1x8x1xf32>
    %16 = vector.broadcast %15 : vector<1x8x1xf32> to vector<1x8x128xf32>
    %17 = arith.subf %11, %16 : vector<1x8x128xf32>
    %18 = tpu.iota {dimensions = array<i32: 2>} : vector<1x8x128xi32>
    %c32_i32 = arith.constant 32 : i32
    %19 = vector.broadcast %c32_i32 : i32 to vector<1x8x128xi32>
    %20 = arith.cmpi slt, %18, %19 : vector<1x8x128xi32>
    %21 = arith.mulf %17, %17 : vector<1x8x128xf32>
    %cst_11 = arith.constant 0.000000e+00 : f32
    %22 = vector.broadcast %cst_11 : f32 to vector<1x8x128xf32>
    %23 = arith.select %20, %21, %22 : vector<1x8x128xi1>, vector<1x8x128xf32>
    %cst_12 = arith.constant dense<0.000000e+00> : vector<1x8xf32>
    %24 = vector.multi_reduction <add>, %23, %cst_12 [2] : vector<1x8x128xf32> to vector<1x8xf32>
    %25 = vector.shape_cast %24 : vector<1x8xf32> to vector<1x8x1xf32>
    %cst_13 = arith.constant 3.125000e-02 : f32
    %26 = vector.broadcast %cst_13 : f32 to vector<1x8x1xf32>
    %27 = arith.mulf %25, %26 : vector<1x8x1xf32>
    %cst_14 = arith.constant 9.99999974E-6 : f32
    %28 = vector.broadcast %cst_14 : f32 to vector<1x8x1xf32>
    %29 = arith.addf %27, %28 : vector<1x8x1xf32>
    %30 = math.rsqrt %29 : vector<1x8x1xf32>
    %31 = vector.broadcast %30 : vector<1x8x1xf32> to vector<1x8x128xf32>
    %32 = vector.broadcast %1 : vector<1x1x128xf32> to vector<1x8x128xf32>
    %33 = arith.mulf %31, %32 : vector<1x8x128xf32>
    %34 = arith.mulf %17, %33 : vector<1x8x128xf32>
    %35 = vector.broadcast %3 : vector<1x1x128xf32> to vector<1x8x128xf32>
    %36 = arith.addf %34, %35 : vector<1x8x128xf32>
    %c0_15 = arith.constant 0 : index
    %37 = arith.index_cast %9 : i32 to index
    %c0_16 = arith.constant 0 : index
    %38 = vector.load %arg4[%c0_15, %37, %c0_16] : memref<1x8x128xf32, #tpu.memory_space<vmem>>, vector<1x8x128xf32>
    tpu.vector_store %arg4[%c0_15, %37, %c0_16], %36 {strides = array<i32>} : memref<1x8x128xf32, #tpu.memory_space<vmem>>, vector<1x8x128xf32>,
    %c0_17 = arith.constant 0 : index
    %c0_18 = arith.constant 0 : index
    %c0_19 = arith.constant 0 : index
    %39 = vector.load %arg5[%c0_17, %c0_18, %c0_19] : memref<1x1x128xf32, #tpu.memory_space<vmem>>, vector<1x1x128xf32>
    %cst_20 = arith.constant dense<0.000000e+00> : vector<1x128xf32>
    %40 = vector.multi_reduction <add>, %36, %cst_20 [1] : vector<1x8x128xf32> to vector<1x128xf32>
    %41 = vector.shape_cast %40 : vector<1x128xf32> to vector<1x1x128xf32>
    %42 = arith.addf %39, %41 : vector<1x1x128xf32>
    %c0_21 = arith.constant 0 : index
    %c0_22 = arith.constant 0 : index
    %c0_23 = arith.constant 0 : index
    %43 = vector.load %arg5[%c0_21, %c0_22, %c0_23] : memref<1x1x128xf32, #tpu.memory_space<vmem>>, vector<1x1x128xf32>
    tpu.vector_store %arg5[%c0_21, %c0_22, %c0_23], %42 {strides = array<i32>} : memref<1x1x128xf32, #tpu.memory_space<vmem>>, vector<1x1x128xf32>,
    %c1_i32_24 = arith.constant 1 : i32
    %c0_25 = arith.constant 0 : index
    %c0_26 = arith.constant 0 : index
    %c0_27 = arith.constant 0 : index
    %44 = vector.load %arg5[%c0_25, %c0_26, %c0_27] : memref<1x1x128xf32, #tpu.memory_space<vmem>>, vector<1x1x128xf32>
    %cst_28 = arith.constant 1.250000e-01 : f32
    %45 = vector.broadcast %cst_28 : f32 to vector<1x1x128xf32>
    %46 = arith.mulf %44, %45 : vector<1x1x128xf32>
    %c0_i32_29 = arith.constant 0 : i32
    %c1_i32_30 = arith.constant 1 : i32
    %47 = arith.muli %c0_i32_29, %c1_i32_30 : i32
    %c0_i32_31 = arith.constant 0 : i32
    %48 = arith.addi %c0_i32_31, %47 : i32
    %c8_i32_32 = arith.constant 8 : i32
    %49 = arith.muli %48, %c8_i32_32 : i32
    %50 = tpu.assume_multiple %49, 8 : i32
    %c0_33 = arith.constant 0 : index
    %51 = arith.index_cast %50 : i32 to index
    %c0_34 = arith.constant 0 : index
    %52 = vector.load %arg4[%c0_33, %51, %c0_34] : memref<1x8x128xf32, #tpu.memory_space<vmem>>, vector<1x8x128xf32>
    %53 = vector.broadcast %46 : vector<1x1x128xf32> to vector<1x8x128xf32>
    %54 = arith.subf %52, %53 : vector<1x8x128xf32>
    %c0_35 = arith.constant 0 : index
    %55 = arith.index_cast %50 : i32 to index
    %c0_36 = arith.constant 0 : index
    %56 = vector.load %arg4[%c0_35, %55, %c0_36] : memref<1x8x128xf32, #tpu.memory_space<vmem>>, vector<1x8x128xf32>
    tpu.vector_store %arg4[%c0_35, %55, %c0_36], %54 {strides = array<i32>} : memref<1x8x128xf32, #tpu.memory_space<vmem>>, vector<1x8x128xf32>,
    %c1_i32_37 = arith.constant 1 : i32
    return
  }
  func.func @transform_0(%arg0: i32) -> (i32, i32, i32) {
    %c0_i32 = arith.constant 0 : i32
    %c0_i32_0 = arith.constant 0 : i32
    %c0_i32_1 = arith.constant 0 : i32
    return %arg0, %c0_i32, %c0_i32_0 : i32, i32, i32
  }
  func.func @transform_1(%arg0: i32) -> (i32, i32) {
    %c0_i32 = arith.constant 0 : i32
    %c0_i32_0 = arith.constant 0 : i32
    %c0_i32_1 = arith.constant 0 : i32
    return %c0_i32, %c0_i32_0 : i32, i32
  }
  func.func @transform_2(%arg0: i32) -> (i32, i32) {
    %c0_i32 = arith.constant 0 : i32
    %c0_i32_0 = arith.constant 0 : i32
    %c0_i32_1 = arith.constant 0 : i32
    return %c0_i32, %c0_i32_0 : i32, i32
  }
  func.func @transform_3(%arg0: i32) -> (i32, i32, i32) {
    %c0_i32 = arith.constant 0 : i32
    %c0_i32_0 = arith.constant 0 : i32
    %c0_i32_1 = arith.constant 0 : i32
    return %arg0, %c0_i32, %c0_i32_0 : i32, i32, i32
  }
}

</mosaic_0001>

<bundles_post_ra>
// kernel: tpu_custom_call.1
= control target key start
LH: loop header
LB: loop body
LE: loop exit
PB: predicated region body
PF: predicated region fallthrough
CT: control target
= control target key end

     0   :  { %8 = vsyncpa [#allocation4], 0  ;;  %s655_s0 = inlined_call_operand.hbm [shape: f32[2,8,128], index: 0, kind: input, shape index: {}]   ;;  %s656_s1 = inlined_call_operand.vmem [shape: f32[1,128], index: 1, kind: input, shape index: {}]   ;;  %s657_s2 = inlined_call_operand.vmem [shape: f32[1,128], index: 2, kind: input, shape index: {}]   ;;  %s658_s3 = inlined_call_operand.hbm [shape: f32[2,8,128], index: 3, kind: output, shape index: {}]  }
   0x1   :  { %10 = vsyncpa [#allocation4 + $0x1], 0 }
   0x2   :  { %11 = vsyncpa [#allocation5], 0 }
   0x3   :  { %13 = vsyncpa [#allocation5 + $0x1], 0  ;;  %s504_s12 = smov 0   ;;  %s506_s13 = smov 0  }
   0x4   :  { %s508_s14 = smov 0   ;;  %s510_s15 = smov 0  }
   0x5 LB: > { %s525_s16 = sadd.s32 4294967295, %s479_s15   ;;  %s324_s17 = sadd.s32 4294967294, %s479_s15   ;;  %s479_s15 = sphi %s510_s15, %s675_s15   ;;  %s475_s14 = sphi %s508_s14, %s674_s14   ;;  %s471_s13 = sphi %s506_s13, %s673_s13   ;;  %s467_s12 = sphi %s504_s12, %s672_s12  }
   0x6   : > { %s529_s18 = sadd.s32 1, %s479_s15   ;;  %s26_s19 = sadd.s32 1, %s475_s14 }
   0x7   : > { %s23_s20 = ssub.s32 %s479_s15, %s529_s18  ;;  %p33_p0 = scmp.ne.s32.totalorder %s475_s14, %s471_s13 }
   0x8   : > { %p24_p1 = scmp.eq.s32.totalorder %s23_s20, 0  ;;  %p34_p2 = scmp.eq.s32.totalorder %s479_s15, 0 }
   0x9   : > { %p39_p3 = scmp.ne.s32.totalorder %s471_s13, %s467_s12  ;;  %p40_p4 = scmp.eq.s32.totalorder %s525_s16, 0 }
   0xa   : > { %s541_s21 = scalar_select %p24_p1, %s475_s14, %s26_s19  }
   0xb   : > { %p543_p5 = por %p34_p2, %p33_p0  ;;  %p547_p6 = por %p40_p4, %p39_p3 }
   0xc   : > { %p105_p7 = scmp.eq.s32.totalorder %s525_s16, 1  ;;  %p111_p8 = scmp.eq.s32.totalorder %s324_s17, 1 }
   0xd   : > { %s662_s23 = scalar_select %p547_p6, 1, 0 }
   0xe   : > { %p350_p10 = scmp.lt.s32.totalorder %s479_s15, 2  ;;  %p554_p11 = por %p105_p7, %p33_p0 }
   0xf   : > { %p558_p12 = por %p111_p8, %p39_p3  ;;  %s137_s26 = sand.u32 1, %s475_s14  }
  0x10   : > { %s663_s24 = scalar_select %p554_p11, 1, 0 }
  0x11   : > { %s664_s25 = scalar_select %p558_p12, 1, 0 }
  0x12   : > { %s328_s27 = sshll.u32 %s479_s15, 7  ;;  %s327_s28 = sshll.u32 %s137_s26, 3 }
  0x13   : > { %s567_s4 = scalar_lea.hbm %s655_s0, %s328_s27  ;;  %s141_s5 = scalar_lea.vmem [#allocation3], %s327_s28 }
  0x14   : > { %s148_s6 = sshll.u32 %s141_s5, 4  ;;  %p571_p13 = pnand %p350_p10, %p543_p5  ;;  %s575_s6 = int_to_ptr.vmem [resolvable:$true] %s148_s6 }
  0x15   : > { %s138_s8 = scalar_lea.sflag [#allocation4], %s137_s26  ;;  %s387_s9 = scalar_lea.hbm %s567_s4, 128 }
  0x16   : > { %p388_p2 = scmp.ne.s32.totalorder %s567_s4, %s387_s9  ;;  %p389_p3 = pneg %p571_p13 }
  0x17   : > { %s392_s17 = scalar_lea.hbm %s655_s0, 256  ;;  %p393_p5 = scmp.lt.s32.totalorder %s567_s4, %s655_s0 }
  0x18   : > { %p390_p4 = pnand %p389_p3, %p388_p2  ;;  %p394_p8 = scmp.lt.s32.totalorder %s392_s17, %s387_s9 }
  0x1a   : > { %p391_p7 = pneg %p390_p4  ;;  %p395_p10 = por %p394_p8, %p393_p5 }
  0x1c   : > { %p396_p9 = pnand %p395_p10, %p391_p7 }
  0x1e   : > { %399 = shalt.err (!%p396_p9)
}
  0x1f   : > { %s400_s22 = scalar_lea.vmem %s575_s6, 128  ;;  %s481_s26 = smov [#allocation3]  }
  0x20   : > { %p401_p0 = scmp.ne.s32.totalorder %s575_s6, %s400_s22  ;;  %s405_s27 = sshll.u32 %s481_s26, 4  ;;  %s406_s27 = int_to_ptr.vmem [resolvable:$false] %s405_s27 }
  0x21   : > { %s407_s28 = scalar_lea.vmem %s406_s27, 256  ;;  %p408_p4 = scmp.lt.s32.totalorder %s575_s6, %s406_s27 }
  0x22   : > { %p403_p1 = pnand %p401_p0, %p389_p3  ;;  %p409_p12 = scmp.lt.s32.totalorder %s407_s28, %s400_s22 }
  0x24   : > { %p404_p2 = pneg %p403_p1  ;;  %p410_p11 = por %p409_p12, %p408_p4 }
  0x26   : > { %p411_p6 = pnand %p410_p11, %p404_p2 }
  0x28   : > { %414 = shalt.err (!%p411_p6)
}
  0x29   : > { %345 = dma.hbm_to_vmem [thread:$0]  (!%p571_p13), %s567_s4, 128, %s575_s6, %s138_s8  }
  0x2a   : > { %p666_p9 = scmp.lt.s32.totalorder %s479_s15, 3  ;;  %p667_p7 = scmp.ge.s32.totalorder %s479_s15, 1 }
  0x2c   : > { %p154_p0 = pnand %p667_p7, %p666_p9 }
  0x2d   : > { %s602_s29 = sand.u32 (!%p154_p0), 1, %s471_s13   ;;  %p668_p6 = scmp.ne.s32.totalorder (!%p154_p0), %s662_s23, 0 }
  0x2e   : > { %157 = sbr.rel (%p154_p0) target bundleno = 401 (0x191), region = 32  ;;  %s330_s30 = sshll.u32 (!%p154_p0), %s602_s29, 3 }
  0x2f   : > { %s160_s5 = scalar_lea.sflag (!%p154_p0), [#allocation4], %s602_s29  ;;  %s163_s7 = scalar_lea.vmem (!%p154_p0), [#allocation3], %s330_s30 }
  0x33   : > { %458 = dma.done.wait (%p668_p6), %s160_s5, 128  }
  0x34   : > { %460 = vsyncadd (%p668_p6), %s160_s5, 4294967168  ;;  %v482_v0 = vmov 0.0   ;;  %v189_v1 = vld [vmem:[%s163_s7] sm:$0xff]  ;;  %v194_v2 = vlaneseq  ;;  %v332_v12 = vld [vmem:[%s656_s1] ss:$0 sm:$0xff]  ;;  %s335_s9 = sshll.u32 %s525_s16, 7 }
  0x35   : > { %188 = vst [vmem:[#allocation2] sm:$0x1] %v482_v0  ;;  %190 = vadd.xlane.f32.xlu0 %v189_v1  ;;  %v333_v15 = vld [vmem:[%s657_s2] ss:$0 sm:$0xff]  ;;  %s185_s10 = scalar_lea.vmem [#allocation6], %s330_s30  ;;  %s252_s20 = scalar_lea.hbm %s658_s3, %s335_s9 }
  0x36   : > { %v195_v4 = vand.u32 127, %v194_v2  ;;  %v234_v26 = vshrl.u32 %v194_v2, 7  ;;  %s254_s11 = sshll.u32 %s185_s10, 4  ;;  %s241_s22 = scalar_lea.sflag [#allocation5], %s602_s29  ;;  %s255_s11 = int_to_ptr.vmem [resolvable:$true] %s254_s11 }
  0x37   : > { %s415_s26 = scalar_lea.vmem %s255_s11, 128  ;;  %p669_p12 = scmp.ne.s32.totalorder %s663_s24, 0 }
  0x38   : > { %vm196_vm0 = vcmp.lt.s32.totalorder %v195_v4, 32  ;;  %v235_v27 = vsub.s32 0, %v234_v26  ;;  %p416_p11 = scmp.ne.s32.totalorder %s255_s11, %s415_s26  ;;  %s483_s27 = smov [#allocation6]  }
  0x39   : > { %s419_s28 = sshll.u32 %s483_s27, 4  ;;  %s420_s28 = int_to_ptr.vmem [resolvable:$false] %s419_s28 }
  0x3a   : > { %p417_p13 = pnand %p416_p11, %p669_p12  ;;  %s421_s16 = scalar_lea.vmem %s420_s28, 256 }
  0x3b   : > { %p422_p3 = scmp.lt.s32.totalorder %s255_s11, %s420_s28  ;;  %p423_p5 = scmp.lt.s32.totalorder %s421_s16, %s415_s26 }
  0x3c   : > { %v220_v23 = vld [vmem:[#allocation2] sm:$0x1]  ;;  %p418_p1 = pneg %p417_p13 }
  0x3d   : > { %p424_p8 = por %p423_p5, %p422_p3 }
  0x3f   : > { %p425_p10 = pnand %p424_p8, %p418_p1 }
  0xbe   : > { %v191_v3 = vpop.xlane.xlu0 %190 }
  0xbf   : > { %v192_v5 = vmul.f32 0.03125, %v191_v3 }
  0xc1   : > { %v193_v6 = vsub.f32 %v189_v1, %v192_v5 }
  0xc3   : > { %v197_v7 = vmul.f32 %v193_v6, %v193_v6 }
  0xc5   : > { %v198_v8 = vsel %vm196_vm0, %v197_v7, 0.0 }
  0xc6   : > { %199 = vadd.xlane.f32.xlu0 %v198_v8 }
 0x14f   : > { %v200_v9 = vpop.xlane.xlu0 %199 }
 0x150   : > { %v201_v10 = vmul.f32 0.03125, %v200_v9 }
 0x152   : > { %v202_v11 = vadd.f32 1e-05, %v201_v10 }
 0x154   : > { %385 = vrsqrt.f32 %v202_v11 }
 0x161   : > { %v386_v13 = vpop.eup %385 }
 0x162   : > { %v210_v14 = vmul.f32 %v386_v13, %v332_v12 }
 0x164   : > { %v211_v16 = vmul.f32 %v210_v14, %v193_v6 }
 0x166   : > { %v218_v17 = vadd.f32 %v333_v15, %v211_v16 }
 0x168   : > { %v221_v18 = vrot.slane %v218_v17, 4 }
 0x16a   : > { %v222_v19 = vadd.f32 %v221_v18, %v218_v17 }
 0x16c   : > { %v223_v20 = vrot.slane %v222_v19, 2 }
 0x16e   : > { %v224_v21 = vadd.f32 %v223_v20, %v222_v19 }
 0x170   : > { %v225_v22 = vrot.slane %v224_v21, 1 }
 0x172   : > { %v226_v24 = vadd.f32 %v225_v22, %v224_v21 }
 0x174   : > { %v227_v25 = vadd.f32 %v226_v24, %v220_v23 }
 0x176   : > { %228 = vst [vmem:[#allocation2] sm:$0x1] %v227_v25 }
 0x17d   : > { %v229_v28 = vld [vmem:[#allocation2] sm:$0x1] }
 0x17e   : > { %v230_v29 = vmul.f32 0.125, %v229_v28 }
 0x180   : > { %v236_v30 = vrot.slane %v230_v29, %v235_v27 }
 0x182   : > { %v238_v31 = vsub.f32 %v218_v17, %v236_v30 }
 0x184   : > { %239 = vst [vmem:[%s185_s10] sm:$0xff] %v238_v31 }
 0x185   : > { %428 = shalt.err (!%p425_p10)
}
 0x186   : > { %s429_s30 = scalar_lea.hbm %s252_s20, 128  ;;  %s433_s7 = scalar_lea.hbm %s658_s3, 256 }
 0x187   : > { %p430_p2 = scmp.ne.s32.totalorder %s252_s20, %s429_s30  ;;  %p434_p7 = scmp.lt.s32.totalorder %s252_s20, %s658_s3 }
 0x188   : > { %p435_p0 = scmp.lt.s32.totalorder %s433_s7, %s429_s30 }
 0x189   : > { %p431_p4 = pnand %p430_p2, %p669_p12 }
 0x18a   : > { %p436_p6 = por %p435_p0, %p434_p7 }
 0x18b   : > { %p432_p9 = pneg %p431_p4 }
 0x18d   : > { %p437_p11 = pnand %p436_p6, %p432_p9 }
 0x18f   : > { %440 = shalt.err (!%p437_p11)
}
 0x190   : > { %340 = dma.vmem_to_hbm [thread:$0]  (%p669_p12), %s255_s11, 128, %s252_s20, %s241_s22  }
 0x191 PF: > { %s266_s6 = sand.u32 1, %s467_s12   ;;  %p670_p13 = scmp.ne.s32.totalorder %s664_s25, 0 }
 0x192   : > { %p671_p1 = scmp.ge.s32.totalorder %s479_s15, 2  ;;  %s267_s8 = scalar_lea.sflag [#allocation5], %s266_s6 }
 0x194   : > { %p347_p3 = pnand %p671_p1, %p670_p13 }
 0x196   : > { %p348_p5 = pneg %p347_p3 }
 0x198   : > { %462 = dma.done.wait (%p348_p5), %s267_s8, 128  }
 0x199   : > { %464 = vsyncadd (%p348_p5), %s267_s8, 4294967168  ;;  %p16_p8 = scmp.ge.s32.totalorder %s529_s18, 4   ;;  %s672_s12 = smov %s471_s13 }
 0x19a   : > { %s673_s13 = smov %s475_s14  ;;  %s674_s14 = smov %s541_s21 }
 0x19b   : > { %s675_s15 = smov %s529_s18  ;;  %18 = sbr.rel (!%p16_p8) target bundleno = 5 (0x5), region = 77 }
 0x1a0   :  { %272 = vsyncpa [#allocation4], 1 }
 0x1a1   :  { %274 = vsyncpa [#allocation4 + $0x1], 1 }
 0x1a2   :  { %275 = vsyncpa [#allocation5], 1 }
 0x1a3   :  { %277 = vsyncpa [#allocation5 + $0x1], 1 }

</bundles_post_ra>
